<compile_context>
chip_gen: v6e
topology: v6e:2x2x1
jax: 0.10.0
libtpu: 0.0.40
codegen_flags: <defaults>
</compile_context>

<pallas_src>
import math

import jax
import jax.numpy as jnp
from jax.experimental import pallas as pl
from jax.experimental.pallas import tpu as pltpu


def _pos_emb_kernel(x_ref, w_ref, b_ref, t_ref, f_ref, o_ref, acc_ref):
    """One (Cout-tile j, K-tile k) grid step.

    x_ref:   [B, tk]  bf16  flattened positional input, one K tile
    w_ref:   [tk, tn] bf16  weight tile in [Cin, Cout] (native MXU [K, N]) layout
    b_ref:   [1, tn]  f32   linear bias tile
    t_ref:   [1, tn]  f32   missing_modality_token tile
    f_ref:   [B, 1]   f32   modality flags (1 = missing, 0 = present)
    o_ref:   [B, tn]  f32   output tile
    acc_ref: [B, tn]  f32   K-axis accumulator scratch
    """
    k = pl.program_id(1)

    @pl.when(k == 0)
    def _():
        acc_ref[...] = jnp.zeros_like(acc_ref)

    acc_ref[...] += jnp.dot(x_ref[...], w_ref[...],
                            preferred_element_type=jnp.float32)

    @pl.when(k == pl.num_programs(1) - 1)
    def _():
        o_ref[...] = (acc_ref[...] + b_ref[...]
                      + t_ref[...] * f_ref[...]).astype(o_ref.dtype)


# Budget for the double-buffered bf16 weight working set: 2 * (tn * tk * 2) bytes.
# 24 MiB keeps total VMEM use well under v7x's 64 MiB (and its 2-TC split), and
# is trivially fine on v5e/v6e's 128 MiB.
_WEIGHT_VMEM_BUDGET = 24 * 1024 * 1024


def _pick_tiles(cout, cin):
    """Pick lane-dense (tn, tk) tiles.

    tn: largest 128-multiple divisor of Cout that still leaves >=4 (else >=2)
        tiles for the "parallel" Cout axis (v7x megacore occupancy).
    tk: whole Cin if the double-buffered weight tile fits the budget, else the
        largest 128-multiple divisor of Cin that does (K grid + accumulator).
    """
    cout_cands = [c for c in (4096, 2048, 1024, 512, 256, 128) if cout % c == 0]
    if not cout_cands:
        tn = cout                      # non-128-multiple Cout: single full block
    else:
        tn = None
        for min_tiles in (4, 2, 1):    # prefer >=4 tiles, then >=2, then largest
            for c in cout_cands:       # candidates are descending -> largest first
                if cout // c >= min_tiles:
                    tn = c
                    break
            if tn is not None:
                break

    if 2 * tn * cin * 2 <= _WEIGHT_VMEM_BUDGET:
        tk = cin                       # whole K resident -> K grid of 1
    else:
        k_cands = [c for c in (8192, 4096, 2048, 1024, 512, 256, 128)
                   if cin % c == 0 and 2 * tn * c * 2 <= _WEIGHT_VMEM_BUDGET]
        tk = k_cands[0] if k_cands else cin
    return tn, tk


def prepare_params(weight, bias, token):
    """ONE-TIME (init-time) parameter preparation — do not call per forward.

    weight: [Cout, Cin] (PyTorch nn.Linear layout), any float dtype
    bias:   [Cout]
    token:  [1, Cout]
    Returns (w_kn, bias_row, token_row) with the weight cast to bf16 and
    pre-transposed to [Cin, Cout] so the kernel contracts in native MXU [K, N]
    layout with no per-call cast and no per-tile transpose.
    """
    w_kn = jnp.asarray(weight).astype(jnp.bfloat16).T          # [Cin, Cout] bf16
    bias_row = jnp.asarray(bias, dtype=jnp.float32).reshape(1, -1)
    token_row = jnp.asarray(token, dtype=jnp.float32).reshape(1, -1)
    return w_kn, bias_row, token_row


def positional_embedding(pos_input, modality_flags, w_kn, bias_row, token_row,
                         *, out_dtype=jnp.float32):
    """Forward pass of PositionalEmbedding.

    pos_input:      [B, C, D, H, W]  (torch NCDHW), Cin = C*D*H*W
    modality_flags: [B]              (1.0 missing, 0.0 present)
    w_kn:           [Cin, Cout]      prepared (bf16, pre-transposed) weight
    bias_row:       [1, Cout]  f32
    token_row:      [1, Cout]  f32
    returns:        [B, Cout // (D*H*W), D, H, W]
    """
    B, C, D, H, W = pos_input.shape
    Cin, Cout = w_kn.shape
    assert math.prod(pos_input.shape[1:]) == Cin
    assert Cout % (D * H * W) == 0, "out_channels must be divisible by D*H*W"

    # Per-call casts touch only the tiny activation (B*Cin) and flags (B).
    x_flat = pos_input.reshape(B, Cin).astype(jnp.bfloat16)
    flags = modality_flags.astype(jnp.float32).reshape(B, 1)

    tn, tk = _pick_tiles(Cout, Cin)
    ncout = Cout // tn
    nk = Cin // tk

    cost = pl.CostEstimate(
        flops=2 * B * Cin * Cout,
        transcendentals=0,
        bytes_accessed=(Cout * Cin * 2      # bf16 weight (dominant term)
                        + B * Cin * 2       # x
                        + B * Cout * 4      # output
                        + 2 * Cout * 4      # bias + token
                        + B * 4))           # flags

    out = pl.pallas_call(
        _pos_emb_kernel,
        out_shape=jax.ShapeDtypeStruct((B, Cout), out_dtype),
        grid=(ncout, nk),
        in_specs=[
            pl.BlockSpec((B, tk), lambda j, k: (0, k)),    # x: all rows, one K tile
            pl.BlockSpec((tk, tn), lambda j, k: (k, j)),   # weight [Cin, Cout] tile
            pl.BlockSpec((1, tn), lambda j, k: (0, j)),    # bias tile
            pl.BlockSpec((1, tn), lambda j, k: (0, j)),    # token tile
            pl.BlockSpec((B, 1), lambda j, k: (0, 0)),     # flags (resident)
        ],
        out_specs=pl.BlockSpec((B, tn), lambda j, k: (0, j)),
        scratch_shapes=[pltpu.VMEM((B, tn), jnp.float32)],  # K accumulator
        compiler_params=pltpu.CompilerParams(
            dimension_semantics=("parallel", "arbitrary"),
            vmem_limit_bytes=48 * 1024 * 1024),
        cost_estimate=cost,
    )(x_flat, w_kn, bias_row, token_row, flags)

    return out.reshape(B, Cout // (D * H * W), D, H, W)


if __name__ == "__main__":
    key = jax.random.PRNGKey(0)
    k_x, k_w, k_b, k_t = jax.random.split(key, 4)

    # Small shapes consistent with the module: 5-D positional input.
    B, C, D, H, W = 2, 4, 2, 4, 4
    in_channels = C * D * H * W        # 128
    out_channels = 256                 # divisible by D*H*W = 32 -> channel dim 8

    pos_input = jax.random.normal(k_x, (B, C, D, H, W), dtype=jnp.float32)
    modality_flags = jnp.array([1.0, 0.0], dtype=jnp.float32)  # [B]

    # nn.Linear-style uniform init; torch inits the token to zeros, use small
    # random values so the missing-modality path is actually exercised.
    bound = 1.0 / (in_channels ** 0.5)
    weight = jax.random.uniform(k_w, (out_channels, in_channels),
                                minval=-bound, maxval=bound, dtype=jnp.float32)
    bias = jax.random.uniform(k_b, (out_channels,),
                              minval=-bound, maxval=bound, dtype=jnp.float32)
    token = 0.01 * jax.random.normal(k_t, (1, out_channels), dtype=jnp.float32)

    # One-time (init) parameter prep — outside the per-call hot path.
    w_kn, bias_row, token_row = prepare_params(weight, bias, token)
    w_kn, bias_row, token_row = jax.block_until_ready((w_kn, bias_row, token_row))

    out = positional_embedding(pos_input, modality_flags, w_kn, bias_row, token_row)
    out = jax.block_until_ready(out)

    # Reference in plain f32 JAX (mirrors the torch forward exactly).
    x_flat = pos_input.reshape(B, -1)
    ref = x_flat @ weight.T + bias + token * modality_flags[:, None]
    ref = ref.reshape(B, -1, D, H, W)

    assert out.shape == (B, out_channels // (D * H * W), D, H, W)
    # bf16 matmul operands with f32 accumulation -> loosened tolerance vs f32 ref.
    assert jnp.allclose(out, ref, atol=3e-2, rtol=3e-2)

    print("KERNEL_OK")
</pallas_src>

<mosaic_0001>
module attributes {stable_mosaic.version = 11 : i64} {
  func.func @_pos_emb_kernel(%arg0: i32, %arg1: i32, %arg2: memref<2x128xbf16, #tpu.memory_space<vmem>>, %arg3: memref<128x128xbf16, #tpu.memory_space<vmem>>, %arg4: memref<1x128xf32, #tpu.memory_space<vmem>>, %arg5: memref<1x128xf32, #tpu.memory_space<vmem>>, %arg6: memref<2x1xf32, #tpu.memory_space<vmem>>, %arg7: memref<2x128xf32, #tpu.memory_space<vmem>>, %arg8: memref<2x128xf32, #tpu.memory_space<vmem>>) attributes {dimension_semantics = [#tpu.dimension_semantics<parallel>, #tpu.dimension_semantics<arbitrary>], iteration_bounds = array<i64: 2, 1>, scalar_prefetch = 0 : i64, scratch_operands = 1 : i64, tpu.core_type = #tpu.core_type<tc>, window_params = [{transform_indices = @transform_0, window_bounds = array<i64: 2, 128>}, {transform_indices = @transform_1, window_bounds = array<i64: 128, 128>}, {transform_indices = @transform_2, window_bounds = array<i64: 1, 128>}, {transform_indices = @transform_3, window_bounds = array<i64: 1, 128>}, {pipeline_mode = #tpu.pipeline_mode<synchronous>, transform_indices = @transform_4, window_bounds = array<i64: 2, 1>}, {transform_indices = @transform_5, window_bounds = array<i64: 2, 128>}]} {
    %c0_i32 = arith.constant 0 : i32
    %0 = arith.cmpi eq, %arg1, %c0_i32 : i32
    %1 = arith.extui %0 : i1 to i32
    %c0_i32_0 = arith.constant 0 : i32
    %2 = arith.cmpi ne, %1, %c0_i32_0 : i32
    scf.if %2 {
      %cst_10 = arith.constant 0.000000e+00 : f32
      %12 = vector.broadcast %cst_10 : f32 to vector<2x128xf32>
      %c0_11 = arith.constant 0 : index
      %c0_12 = arith.constant 0 : index
      %13 = vector.load %arg8[%c0_11, %c0_12] : memref<2x128xf32, #tpu.memory_space<vmem>>, vector<2x128xf32>
      tpu.vector_store %arg8[%c0_11, %c0_12], %12 {strides = array<i32>} : memref<2x128xf32, #tpu.memory_space<vmem>>, vector<2x128xf32>,
    } else {
    }
    %c0 = arith.constant 0 : index
    %c0_1 = arith.constant 0 : index
    %3 = vector.load %arg8[%c0, %c0_1] : memref<2x128xf32, #tpu.memory_space<vmem>>, vector<2x128xf32>
    %c0_2 = arith.constant 0 : index
    %c0_3 = arith.constant 0 : index
    %4 = vector.load %arg2[%c0_2, %c0_3] : memref<2x128xbf16, #tpu.memory_space<vmem>>, vector<2x128xbf16>
    %c0_4 = arith.constant 0 : index
    %c0_5 = arith.constant 0 : index
    %5 = vector.load %arg3[%c0_4, %c0_5] : memref<128x128xbf16, #tpu.memory_space<vmem>>, vector<128x128xbf16>
    %cst = arith.constant dense<0.000000e+00> : vector<2x128xf32>
    %6 = tpu.matmul %4, %5, %cst {dimension_numbers = #tpu.dot_dimension_numbers<[1], [0], [0], [1], [0, 0, 1, 1], [], []>} : vector<2x128xbf16>, vector<128x128xbf16>, vector<2x128xf32> -> vector<2x128xf32>
    %7 = arith.addf %3, %6 : vector<2x128xf32>
    %c0_6 = arith.constant 0 : index
    %c0_7 = arith.constant 0 : index
    %8 = vector.load %arg8[%c0_6, %c0_7] : memref<2x128xf32, #tpu.memory_space<vmem>>, vector<2x128xf32>
    tpu.vector_store %arg8[%c0_6, %c0_7], %7 {strides = array<i32>} : memref<2x128xf32, #tpu.memory_space<vmem>>, vector<2x128xf32>,
    %c0_i32_8 = arith.constant 0 : i32
    %9 = arith.cmpi eq, %arg1, %c0_i32_8 : i32
    %10 = arith.extui %9 : i1 to i32
    %c0_i32_9 = arith.constant 0 : i32
    %11 = arith.cmpi ne, %10, %c0_i32_9 : i32
    scf.if %11 {
      %c0_10 = arith.constant 0 : index
      %c0_11 = arith.constant 0 : index
      %12 = vector.load %arg8[%c0_10, %c0_11] : memref<2x128xf32, #tpu.memory_space<vmem>>, vector<2x128xf32>
      %c0_12 = arith.constant 0 : index
      %c0_13 = arith.constant 0 : index
      %13 = vector.load %arg4[%c0_12, %c0_13] : memref<1x128xf32, #tpu.memory_space<vmem>>, vector<1x128xf32>
      %14 = vector.broadcast %13 : vector<1x128xf32> to vector<2x128xf32>
      %15 = arith.addf %12, %14 : vector<2x128xf32>
      %c0_14 = arith.constant 0 : index
      %c0_15 = arith.constant 0 : index
      %16 = vector.load %arg5[%c0_14, %c0_15] : memref<1x128xf32, #tpu.memory_space<vmem>>, vector<1x128xf32>
      %c0_16 = arith.constant 0 : index
      %c0_17 = arith.constant 0 : index
      %17 = vector.load %arg6[%c0_16, %c0_17] : memref<2x1xf32, #tpu.memory_space<vmem>>, vector<2x1xf32>
      %18 = vector.broadcast %16 : vector<1x128xf32> to vector<2x128xf32>
      %19 = vector.broadcast %17 : vector<2x1xf32> to vector<2x128xf32>
      %20 = arith.mulf %18, %19 : vector<2x128xf32>
      %21 = arith.addf %15, %20 : vector<2x128xf32>
      %c0_18 = arith.constant 0 : index
      %c0_19 = arith.constant 0 : index
      %22 = vector.load %arg7[%c0_18, %c0_19] : memref<2x128xf32, #tpu.memory_space<vmem>>, vector<2x128xf32>
      tpu.vector_store %arg7[%c0_18, %c0_19], %21 {strides = array<i32>} : memref<2x128xf32, #tpu.memory_space<vmem>>, vector<2x128xf32>,
    } else {
    }
    return
  }
  func.func @transform_0(%arg0: i32, %arg1: i32) -> (i32, i32) {
    %c0_i32 = arith.constant 0 : i32
    %c0_i32_0 = arith.constant 0 : i32
    return %c0_i32, %arg1 : i32, i32
  }
  func.func @transform_1(%arg0: i32, %arg1: i32) -> (i32, i32) {
    %c0_i32 = arith.constant 0 : i32
    return %arg1, %arg0 : i32, i32
  }
  func.func @transform_2(%arg0: i32, %arg1: i32) -> (i32, i32) {
    %c0_i32 = arith.constant 0 : i32
    %c0_i32_0 = arith.constant 0 : i32
    return %c0_i32, %arg0 : i32, i32
  }
  func.func @transform_3(%arg0: i32, %arg1: i32) -> (i32, i32) {
    %c0_i32 = arith.constant 0 : i32
    %c0_i32_0 = arith.constant 0 : i32
    return %c0_i32, %arg0 : i32, i32
  }
  func.func @transform_4(%arg0: i32, %arg1: i32) -> (i32, i32) {
    %c0_i32 = arith.constant 0 : i32
    %c0_i32_0 = arith.constant 0 : i32
    %c0_i32_1 = arith.constant 0 : i32
    return %c0_i32, %c0_i32_0 : i32, i32
  }
  func.func @transform_5(%arg0: i32, %arg1: i32) -> (i32, i32) {
    %c0_i32 = arith.constant 0 : i32
    %c0_i32_0 = arith.constant 0 : i32
    return %c0_i32, %arg0 : i32, i32
  }
}

</mosaic_0001>

<bundles_post_ra>
// kernel: tpu_custom_call.1
= control target key start
LH: loop header
LB: loop body
LE: loop exit
PB: predicated region body
PF: predicated region fallthrough
CT: control target
= control target key end

     0   :  { %s1088_s0 = inlined_call_operand.hbm [shape: bf16[2,128], index: 0, kind: input, shape index: {}]   ;;  %s1089_s1 = inlined_call_operand.hbm [shape: bf16[128,256], index: 1, kind: input, shape index: {}]   ;;  %s1090_s2 = inlined_call_operand.vmem [shape: f32[1,256], index: 2, kind: input, shape index: {}]   ;;  %s1091_s3 = inlined_call_operand.vmem [shape: f32[1,256], index: 3, kind: input, shape index: {}]   ;;  %s1092_s4 = inlined_call_operand.vmem [shape: f32[2,1], index: 4, kind: input, shape index: {}]   ;;  %s1093_s5 = inlined_call_operand.hbm [shape: f32[2,256], index: 5, kind: output, shape index: {}]  }
   0x1   :  { %1098 = sst [smem:[#allocation14_spill]] %s1088_s0 }
   0x2   :  { %10 = vsyncpa [#allocation4], 0 }
   0x3   :  { %11 = vsyncpa [#allocation7], 0 }
   0x4   :  { %13 = vsyncpa [#allocation7 + $0x1], 0 }
   0x5   :  { %14 = vsyncpa [#allocation5], 0 }
   0x6   :  { %16 = vsyncpa [#allocation5 + $0x1], 0  ;;  %s897_s18 = smov 0   ;;  %s899_s19 = smov 0  }
   0x7   :  { %s901_s20 = smov 0   ;;  %s903_s21 = smov 0  }
   0x8   :  { %s905_s22 = smov 0   ;;  %s907_s23 = smov 0  }
   0x9 LB: > { %1099 = sst [smem:[#allocation12_spill]] %s856_s23  ;;  %s576_s24 = sadd.s32 4294967295, %s856_s23   ;;  %s856_s23 = sphi %s907_s23, %s1121_s23   ;;  %s852_s22 = sphi %s905_s22, %s1120_s22   ;;  %s848_s21 = sphi %s903_s21, %s1119_s21   ;;  %s844_s20 = sphi %s901_s20, %s1118_s20   ;;  %s840_s19 = sphi %s899_s19, %s1117_s19   ;;  %s836_s18 = sphi %s897_s18, %s1116_s18  }
   0xa   : > { %s577_s25 = sadd.s32 4294967294, %s856_s23   ;;  %s69_s26 = sadd.s32 1, %s844_s20 }
   0xb   : > { %p76_p0 = scmp.ne.s32.totalorder %s844_s20, %s840_s19  ;;  %p77_p1 = scmp.eq.s32.totalorder %s856_s23, 0 }
   0xc   : > { %p82_p2 = scmp.ne.s32.totalorder %s840_s19, %s836_s18  ;;  %p935_p3 = scmp.eq.s32.totalorder %s576_s24, 0 }
   0xd   : > { %p179_p4 = scmp.eq.s32.totalorder %s576_s24, 1  ;;  %p939_p5 = por %p77_p1, %p76_p0 }
   0xe   : > { %p185_p6 = scmp.eq.s32.totalorder %s577_s25, 1  ;;  %p945_p7 = por %p935_p3, %p82_p2 }
   0xf   : > { %p949_p8 = por %p179_p4, %p76_p0  ;;  %p578_p10 = scmp.ge.s32.totalorder %s856_s23, 1 }
  0x10   : > { %p953_p9 = por %p185_p6, %p82_p2  ;;  %p192_p11 = scmp.lt.s32.totalorder %s856_s23, 3 }
  0x11   : > { %s1103_s30 = scalar_select %p949_p8, 1, 0 }
  0x12   : > { %s1104_s6 = scalar_select %p953_p9, 1, 0 }
  0x13   : > { %p960_p13 = pnand %p578_p10, %p192_p11  ;;  %s858_s8 = smov [#allocation3]  }
  0x14   : > { %1105 = sst [smem:[#allocation13_spill]] %s1104_s6  ;;  %s207_s9 = sshll.u32 %s858_s8, 4  ;;  %s208_s9 = int_to_ptr.vmem [resolvable:$true] %s207_s9 }
  0x15   : > { %p651_p1 = scmp.lt.s32.totalorder %s856_s23, 2  ;;  %p638_p0 = pneg %p960_p13 }
  0x16   : > { %s34_s12 = sadd.s32 1, %s852_s22  ;;  %s221_s14 = sand.u32 1, %s844_s20  }
  0x17   : > { %p969_p4 = pnand %p651_p1, %p939_p5  ;;  %p975_p2 = pnand %p638_p0, %p935_p3 }
  0x18   : > { %p980_p6 = scmp.ge.s32.totalorder %s34_s12, 2  ;;  %s729_s15 = scalar_lea.vmem %s208_s9, 16 }
  0x19   : > { %p720_p10 = pneg %p975_p2  ;;  %p730_p11 = scmp.ne.s32.totalorder %s208_s9, %s729_s15 }
  0x1a   : > { %s736_s16 = scalar_lea.vmem %s208_s9, 32  ;;  %p737_p12 = scmp.lt.s32.totalorder %s208_s9, %s208_s9 }
  0x1b   : > { %p732_p5 = pnand %p730_p11, %p720_p10  ;;  %p738_p9 = scmp.lt.s32.totalorder %s736_s16, %s729_s15 }
  0x1d   : > { %p733_p1 = pneg %p732_p5  ;;  %p739_p0 = por %p738_p9, %p737_p12 }
  0x1f   : > { %p740_p8 = pnand %p739_p0, %p733_p1 }
  0x21   : > { %743 = shalt.err (!%p740_p8)
}
  0x22   : > { %s1110_s0 = sld [smem:[#allocation14_spill]]  ;;  %s1123_s12 = smov (%p980_p6, %s34_s12), 0 }
  0x23   : > { %s581_s25 = sshll.u32 %s221_s14, 6  ;;  %s65_s28 = ssub.s32 %s852_s22, %s1123_s12 }
  0x24   : > { %p67_p9 = scmp.eq.s32.totalorder %s65_s28, 0  ;;  %s582_s8 = sshll.u32 %s852_s22, 6 }
  0x25   : > { %s233_s16 = scalar_lea.hbm %s1089_s1, %s582_s8  ;;  %s225_s17 = scalar_lea.vmem [#allocation6], %s581_s25 }
  0x26   : > { %s234_s24 = sshll.u32 %s225_s17, 4  ;;  %s222_s6 = scalar_lea.sflag [#allocation7], %s221_s14  ;;  %s235_s24 = int_to_ptr.vmem [resolvable:$true] %s234_s24 }
  0x27   : > { %s1005_s23 = scalar_select %p67_p9, %s844_s20, %s69_s26  }
  0x28   : > { %641 = dma.hbm_to_vmem [thread:$0]  (!%p975_p2), %s1110_s0, 16, %s208_s9, [#allocation4]  }
  0x29   : > { %p746_p8 = pneg %p969_p4  ;;  %s757_s9 = scalar_lea.vmem %s235_s24, 1024 }
  0x2a   : > { %p758_p12 = scmp.ne.s32.totalorder %s235_s24, %s757_s9  ;;  %s859_s13 = smov [#allocation6]  }
  0x2b   : > { %s762_s28 = sshll.u32 %s859_s13, 4  ;;  %s763_s28 = int_to_ptr.vmem [resolvable:$false] %s762_s28 }
  0x2c   : > { %p760_p2 = pnand %p758_p12, %p746_p8  ;;  %s764_s0 = scalar_lea.vmem %s763_s28, 2048 }
  0x2d   : > { %p765_p10 = scmp.lt.s32.totalorder %s235_s24, %s763_s28  ;;  %p766_p11 = scmp.lt.s32.totalorder %s764_s0, %s757_s9 }
  0x2e   : > { %p761_p6 = pneg %p760_p2 }
  0x2f   : > { %p767_p5 = por %p766_p11, %p765_p10 }
  0x31   : > { %p768_p1 = pnand %p767_p5, %p761_p6 }
  0x33   : > { %771 = shalt.err (!%p768_p1)
}
  0x34   : > { %s860_s25 = smov 128   ;;  %s861_s26 = smov 64  }
  0x35   : > { %s862_s8 = smov 4   ;;  %258 = sbr.rel (%p960_p13) target bundleno = 316 (0x13c), region = 40 }
  0x36   : > { %645 = dma.hbm_to_vmem [thread:$0]  (!%p969_p4), %s233_s16, 1024, %s235_s24, %s222_s6, %s860_s25, %s861_s26, %s862_s8  }
  0x3a   : > { %823 = dma.done.wait (%p935_p3), [#allocation4], 16  }
  0x3b   : > { %825 = vsyncadd (%p935_p3), [#allocation4], 4294967280  ;;  %s1018_s0 = sand.u32 1, %s840_s19  }
  0x3c   : > { %s585_s14 = sshll.u32 %s1018_s0, 6  ;;  %s265_s15 = scalar_lea.sflag [#allocation7], %s1018_s0 }
  0x3d   : > { %s1022_s11 = scalar_lea.vmem [#allocation6], %s585_s14 }
  0x3e   : > { %827 = dma.done.wait (%p945_p7), %s265_s15, 1024  }
  0x3f   : > { %829 = vsyncadd (%p945_p7), %s265_s15, 4294966272  ;;  %v863_v0 = vmov 0.0   ;;  %vm864_vm0 = vmmov 0   ;;  %v865_v1 = vmov 0   ;;  %v710_v2 = vld [vmem:[%s1022_s11 + $0x38] sm:$0xff]   ;;  %v711_v3 = vld [vmem:[%s1022_s11 + $0x30] sm:$0xff]  }
  0x40   : > { %610 = vmatprep.subr.bf16.mxu0 %v863_v0  ;;  %313 = vst [vmem:[#allocation2] sm:$0x3] %v863_v0  ;;  %626 = vmatprep.mubr.msk.bf16.mxu0 %vm864_vm0, %v863_v0  ;;  %v712_v4 = vld [vmem:[%s1022_s11 + $0x28] sm:$0xff]   ;;  %v435_v5 = vld [vmem:[%s1092_s4] sm:$0x3]  ;;  %v713_v6 = vld [vmem:[%s1022_s11 + $0x20] sm:$0xff]  }
  0x41   : > { %709 = vset.pattern.permute.xlu0 %v865_v1  ;;  %611 = vmatpush3.bf16.msra.mxu0 %v710_v2  ;;  %v714_v7 = vld [vmem:[%s1022_s11 + $0x18] sm:$0xff]   ;;  %v715_v8 = vld [vmem:[%s1022_s11 + $0x10] sm:$0xff]   ;;  %v716_v9 = vld [vmem:[%s1022_s11 + $0x8] sm:$0xff]   ;;  %p302_p3 = scmp.lt.s32.totalorder %s848_s21, 1  ;;  %s586_s17 = sshll.u32 %s1018_s0, 1 }
  0x42   : > { %612 = vmatprep.subr.bf16.mxu0 %v863_v0  ;;  %444 = vperm.xlu0 %709, %v435_v5   ;;  %v717_v10 = vld [vmem:[%s1022_s11] sm:$0xff]   ;;  %v315_v11 = vld [vmem:[#allocation3] sm:$0x1]  ;;  %s598_s28 = sshll.u32 %s848_s21, 5  ;;  %s300_s25 = scalar_lea.vmem [#allocation8], %s586_s17 }
  0x43   : > { %s303_s6 = scalar_select %p302_p3, %s848_s21, 1 }
  0x44   : > { %s464_s26 = sshll.u32 %s300_s25, 4  ;;  %s462_s15 = scalar_lea.hbm %s1093_s5, %s598_s28  ;;  %s465_s26 = int_to_ptr.vmem [resolvable:$true] %s464_s26 }
  0x45   : > { %613 = vmatpush3.bf16.msra.mxu0 %v711_v3  ;;  %s307_s16 = scalar_lea.vmem %s1091_s3, %s303_s6  ;;  %s304_s13 = scalar_lea.vmem %s1090_s2, %s303_s6 }
  0x46   : > { %614 = vmatprep.subr.bf16.mxu0 %v863_v0  ;;  %v596_v19 = vld [vmem:[%s307_s16] ss:$0 sm:$0xff]  ;;  %s451_s11 = scalar_lea.sflag [#allocation5], %s1018_s0  ;;  %s772_s27 = scalar_lea.vmem %s465_s26, 32 }
  0x47   : > { %v314_v12 = vld [vmem:[#allocation2] sm:$0x3]  ;;  %p773_p7 = scmp.ne.s32.totalorder %s465_s26, %s772_s27  ;;  %p1111_p13 = scmp.ne.s32.totalorder %s1103_s30, 0 }
  0x48   : > { %v595_v20 = vld [vmem:[%s304_s13] ss:$0 sm:$0xff]  ;;  %s866_s29 = smov [#allocation8]  }
  0x49   : > { %615 = vmatpush3.bf16.msra.mxu0 %v712_v4  ;;  %p774_p4 = pnand %p773_p7, %p1111_p13  ;;  %s776_s6 = sshll.u32 %s866_s29, 4  ;;  %s777_s6 = int_to_ptr.vmem [resolvable:$false] %s776_s6 }
  0x4a   : > { %616 = vmatprep.subr.bf16.mxu0 %v863_v0  ;;  %s778_s21 = scalar_lea.vmem %s777_s6, 64  ;;  %p779_p9 = scmp.lt.s32.totalorder %s465_s26, %s777_s6 }
  0x4b   : > { %p775_p0 = pneg %p774_p4  ;;  %p780_p8 = scmp.lt.s32.totalorder %s778_s21, %s772_s27 }
  0x4d   : > { %617 = vmatpush3.bf16.msra.mxu0 %v713_v6  ;;  %p781_p12 = por %p780_p8, %p779_p9 }
  0x4e   : > { %618 = vmatprep.subr.bf16.mxu0 %v863_v0 }
  0x4f   : > { %p782_p2 = pnand %p781_p12, %p775_p0 }
  0x51   : > { %619 = vmatpush3.bf16.msra.mxu0 %v714_v7 }
  0x52   : > { %620 = vmatprep.subr.bf16.mxu0 %v863_v0 }
  0x55   : > { %621 = vmatpush3.bf16.msra.mxu0 %v715_v8 }
  0x56   : > { %622 = vmatprep.subr.bf16.mxu0 %v863_v0 }
  0x59   : > { %623 = vmatpush3.bf16.msra.mxu0 %v716_v9 }
  0x5a   : > { %624 = vmatprep.subr.bf16.mxu0 %v863_v0 }
  0x5d   : > { %625 = vmatpush3.bf16.msra.mxu0 %v717_v10 }
  0x60   : > { %627 = vmatmul.mubr.bf16.vlgmr.msra.gmra.mxu0 %v315_v11 }
  0xbd   : > { %v445_v18 = vpop.permute.xlu0 %444 }
  0xbe   : > { %v447_v21 = vmul.f32 %v596_v19, %v445_v18 }
 0x120   : > { %v414_v13 = vpop.f32.mrf.mxu0 }
 0x121   : > { %v420_v14 = vadd.f32 %v414_v13, %v314_v12 }
 0x122   : > { %v628_v15 = vpop.f32.mrf.mxu0 }
 0x123   : > { %421 = vst [vmem:[#allocation2] sm:$0x3] %v420_v14 }
 0x124   : > { %v417_v16 = vpop.f32.mrf.mxu0 }
 0x126   : > { %v629_v17 = vpop.f32.mrf.mxu0 }
 0x12a   : > { %v425_v22 = vld [vmem:[#allocation2] sm:$0x3] }
 0x12b   : > { %v433_v23 = vadd.f32 %v595_v20, %v425_v22 }
 0x12d   : > { %v448_v24 = vadd.f32 %v447_v21, %v433_v23 }
 0x12f   : > { %449 = vst [vmem:[%s300_s25] sm:$0x3] %v448_v24 }
 0x130   : > { %785 = shalt.err (!%p782_p2)
}
 0x131   : > { %s786_s7 = scalar_lea.hbm %s462_s15, 32  ;;  %s790_s16 = scalar_lea.hbm %s1093_s5, 64 }
 0x132   : > { %p787_p6 = scmp.ne.s32.totalorder %s462_s15, %s786_s7  ;;  %p791_p5 = scmp.lt.s32.totalorder %s462_s15, %s1093_s5 }
 0x133   : > { %p792_p1 = scmp.lt.s32.totalorder %s790_s16, %s786_s7 }
 0x134   : > { %p788_p10 = pnand %p787_p6, %p1111_p13 }
 0x135   : > { %p793_p3 = por %p792_p1, %p791_p5 }
 0x136   : > { %p789_p11 = pneg %p788_p10 }
 0x138   : > { %p794_p7 = pnand %p793_p3, %p789_p11 }
 0x13a   : > { %797 = shalt.err (!%p794_p7)
}
 0x13b   : > { %636 = dma.vmem_to_hbm [thread:$0]  (%p1111_p13), %s465_s26, 32, %s462_s15, %s451_s11  }
 0x13c PF: > { %s1112_s9 = sld [smem:[#allocation13_spill]]  ;;  %s476_s28 = sand.u32 1, %s836_s18  }
 0x13d   : > { %s1113_s13 = sld [smem:[#allocation12_spill]]  ;;  %s477_s25 = scalar_lea.sflag [#allocation5], %s476_s28 }
 0x142   : > { %p1114_p4 = scmp.ne.s32.totalorder %s1112_s9, 0 }
 0x143   : > { %p1115_p0 = scmp.ge.s32.totalorder %s1113_s13, 2 }
 0x145   : > { %p647_p9 = pnand %p1115_p0, %p1114_p4 }
 0x147   : > { %p648_p8 = pneg %p647_p9 }
 0x149   : > { %831 = dma.done.wait (%p648_p8), %s477_s25, 32  }
 0x14a   : > { %833 = vsyncadd (%p648_p8), %s477_s25, 4294967264  ;;  %s22_s8 = sadd.s32 1, %s1113_s13   ;;  %s1116_s18 = smov %s840_s19 }
 0x14b   : > { %p19_p12 = scmp.ge.s32.totalorder %s22_s8, 4   ;;  %s1117_s19 = smov %s844_s20 }
 0x14c   : > { %s1118_s20 = smov %s1005_s23  ;;  %s1119_s21 = smov %s852_s22 }
 0x14d   : > { %s1120_s22 = smov %s1123_s12  ;;  %s1121_s23 = smov %s22_s8 }
 0x14e   :  { %21 = sbr.rel (!%p19_p12) target bundleno = 9 (0x9), region = 105 }
 0x153   :  { %482 = vsyncpa [#allocation4], 1 }
 0x154   :  { %484 = vsyncpa [#allocation4 + $0x1], 1 }
 0x155   :  { %485 = vsyncpa [#allocation7], 1 }
 0x156   :  { %487 = vsyncpa [#allocation7 + $0x1], 1 }
 0x157   :  { %488 = vsyncpa [#allocation5], 1 }
 0x158   :  { %490 = vsyncpa [#allocation5 + $0x1], 1 }

</bundles_post_ra>
